<compile_context>
chip_gen: v5e
topology: v5e:2x2
jax: 0.10.0
libtpu: 0.0.40
codegen_flags: <defaults>
</compile_context>

<pallas_src>
import functools
import math

import jax
import jax.numpy as jnp
import numpy as np
from jax.experimental import pallas as pl
from jax.experimental.pallas import tpu as pltpu


_LANE = 128
_SUBLANE = 8
_FALLBACK_VMEM_BUDGET = 40 * 1024 * 1024   # v7x-safe fallback (64 MiB physical)


def _round_up(x, m):
    return ((x + m - 1) // m) * m


def _vmem_budget_bytes():
    """Generation-aware VMEM budget (~70% of physical), v7x-safe fallback."""
    try:
        info = pltpu.get_tpu_info()
        cap = getattr(info, "vmem_capacity_bytes", None)
        if cap:
            return int(0.70 * int(cap))
    except Exception:
        pass
    return _FALLBACK_VMEM_BUDGET


# ----------------------------------------------------------------------------
# Pallas kernel: cached power expansion + sum-of-q MXU matmuls (+ bias)
# ----------------------------------------------------------------------------
def _superonn_kernel(patch_ref, w_ref, b_ref, o_ref, pow_ref, *, q, dot_dtype):
    # patch_ref: (tm, kk_pad)     im2col patches (bf16 fast path / f32 accurate path)
    # w_ref:     (q, kk_pad, to)  weights, one (K, N) slab per power
    # b_ref:     (1, to)          f32 bias tile
    # o_ref:     (tm, to)         f32 output tile
    # pow_ref:   (q, tm, kk_pad)  persistent VMEM scratch: cached power tiles
    j = pl.program_id(1)

    # Powers are computed once per row tile (at j == 0) in f32 on the VPU and
    # cached; every output-channel tile j reuses them (j axis is 'arbitrary',
    # so the carry across j is sequential per core).
    @pl.when(j == 0)
    def _():
        base = patch_ref[...].astype(jnp.float32)
        pow_ref[0] = base.astype(dot_dtype)
        cur = base
        for i in range(1, q):
            cur = cur * base                              # x**(i+1) in f32
            pow_ref[i] = cur.astype(dot_dtype)

    # Sum of q MXU matmuls with f32 accumulation (no unaligned q*K concat).
    acc = jnp.dot(pow_ref[0], w_ref[0], preferred_element_type=jnp.float32)
    for i in range(1, q):
        acc = acc + jnp.dot(pow_ref[i], w_ref[i],
                            preferred_element_type=jnp.float32)
    o_ref[...] = acc + b_ref[...]                         # bias in f32, lane-dense store


# ----------------------------------------------------------------------------
# Host-side im2col straight into (M, k*k*C) layout (column order (kh, kw, c))
# ----------------------------------------------------------------------------
def _im2col_nhwc(x, k, stride, padding, dilation):
    """x: (N, C, H, W) -> patches (N*OH*OW, k*k*C), plus (OH, OW)."""
    n, c, h, w = x.shape
    oh = (h + 2 * padding - dilation * (k - 1) - 1) // stride + 1
    ow = (w + 2 * padding - dilation * (k - 1) - 1) // stride + 1
    xh = jnp.transpose(x, (0, 2, 3, 1))                   # NHWC (raw x, not patches)
    xp = jnp.pad(xh, ((0, 0), (padding, padding), (padding, padding), (0, 0)))
    slices = []
    for kh in range(k):
        for kw in range(k):
            h0 = kh * dilation
            w0 = kw * dilation
            sl = xp[:, h0:h0 + (oh - 1) * stride + 1:stride,
                       w0:w0 + (ow - 1) * stride + 1:stride, :]   # (N, OH, OW, C)
            slices.append(sl)
    pat = jnp.stack(slices, axis=3)                       # (N, OH, OW, k*k, C)
    return pat.reshape(n * oh * ow, k * k * c), oh, ow


# ----------------------------------------------------------------------------
# Forward wrapper
# ----------------------------------------------------------------------------
def superonn2d_forward(x, weights, bias, *, q, kernel_size, padding=0, stride=1,
                       dilation=1, tm=512, mxu_dtype=jnp.bfloat16):
    """x: (N, C, H, W) f32; weights: (O, q*C, k, k) f32; bias: (O,) f32."""
    assert q >= 1
    n, c, h, w = x.shape
    o_ch = weights.shape[0]
    k = kernel_size
    kk = c * k * k
    mxu_bytes = jnp.dtype(mxu_dtype).itemsize

    patches, oh, ow = _im2col_nhwc(x, k, stride, padding, dilation)   # (M, kk)
    m = patches.shape[0]

    # Lane-dense padding of contraction (K) and output-channel (O) dims.
    kk_pad = _round_up(kk, _LANE)
    o_pad = _round_up(o_ch, 2 * _LANE) if o_ch > _LANE else _LANE
    to = 2 * _LANE if (o_pad % (2 * _LANE) == 0) else _LANE

    # Row tile: as large as possible under the generation-aware VMEM budget,
    # capped so there are >= 2 row tiles (keeps both v7x TensorCores busy).
    m8 = _round_up(m, _SUBLANE)
    tm_eff = min(_round_up(tm, _SUBLANE), m8)
    if m8 >= 2 * _SUBLANE:
        tm_eff = min(tm_eff, _round_up((m8 + 1) // 2, _SUBLANE))

    def vmem_est(t):
        return (2 * (t * kk_pad * mxu_bytes               # double-buffered patch tile
                     + q * kk_pad * to * mxu_bytes        # weight slab
                     + to * 4                             # bias tile
                     + t * to * 4)                        # f32 output tile
                + q * t * kk_pad * mxu_bytes)             # persistent power scratch

    budget = _vmem_budget_bytes()
    while vmem_est(tm_eff) > budget and tm_eff > 256:
        tm_eff = max(256, tm_eff // 2)
    # TODO(synk): if vmem_est(tm_eff) is still over budget here (very large
    # q*C*k*k), add a K-reduction grid axis with an f32 VMEM accumulator and
    # pl.when init/finalize instead of proceeding.
    m_pad = _round_up(m, tm_eff)

    # Cast to the MXU dtype *before* the single pad pass (halves that HBM pass
    # and the dominant patch read on the bf16 path).
    patches = jnp.pad(patches.astype(mxu_dtype), ((0, m_pad - m), (0, kk_pad - kk)))

    # weights (O, q*C, kh, kw) -> (q, kh, kw, C, O) so rows match the (kh, kw, c)
    # column order of the patches; pad to (q, kk_pad, o_pad).
    w_mat = jnp.transpose(weights.reshape(o_ch, q, c, k, k), (1, 3, 4, 2, 0))
    w_mat = w_mat.reshape(q, kk, o_ch)
    w_mat = jnp.pad(w_mat, ((0, 0), (0, kk_pad - kk), (0, o_pad - o_ch)))
    w_mat = w_mat.astype(mxu_dtype)
    b_mat = jnp.pad(bias.astype(jnp.float32), (0, o_pad - o_ch)).reshape(1, o_pad)

    grid = (m_pad // tm_eff, o_pad // to)
    vmem_limit = int(min(budget, max(int(1.5 * vmem_est(tm_eff)), 32 * 1024 * 1024)))

    kernel = functools.partial(_superonn_kernel, q=q, dot_dtype=mxu_dtype)
    out_flat = pl.pallas_call(
        kernel,
        out_shape=jax.ShapeDtypeStruct((m_pad, o_pad), jnp.float32),
        grid_spec=pltpu.PrefetchScalarGridSpec(
            num_scalar_prefetch=0,
            grid=grid,
            in_specs=[
                pl.BlockSpec((tm_eff, kk_pad), lambda i, j: (i, 0)),
                pl.BlockSpec((q, kk_pad, to), lambda i, j: (0, 0, j)),
                pl.BlockSpec((1, to), lambda i, j: (0, j)),
            ],
            out_specs=pl.BlockSpec((tm_eff, to), lambda i, j: (i, j)),
            scratch_shapes=[pltpu.VMEM((q, tm_eff, kk_pad), mxu_dtype)],
        ),
        compiler_params=pltpu.CompilerParams(
            dimension_semantics=("parallel", "arbitrary"),
            vmem_limit_bytes=vmem_limit),
    )(patches, w_mat, b_mat)

    out = out_flat[:m, :o_ch].reshape(n, oh, ow, o_ch)
    # TODO(synk): offer NHWC / bf16 output to skip this transpose and halve
    # write bytes when the downstream consumer tolerates it.
    return jnp.transpose(out, (0, 3, 1, 2))               # NCHW


# ----------------------------------------------------------------------------
# Deterministic parameter initialization (mirrors reset_parameters, weight_init='tanh')
# ----------------------------------------------------------------------------
def init_params(key, in_channels, out_channels, kernel_size, q):
    k_w, k_b = jax.random.split(key)
    fan_in = q * in_channels * kernel_size * kernel_size
    fan_out = out_channels * kernel_size * kernel_size
    gain = 5.0 / 3.0  # tanh gain
    limit = gain * math.sqrt(6.0 / (fan_in + fan_out))
    weights = jax.random.uniform(
        k_w, (out_channels, q * in_channels, kernel_size, kernel_size),
        minval=-limit, maxval=limit, dtype=jnp.float32)
    bound = 1.0 / math.sqrt(fan_in)
    bias = jax.random.uniform(k_b, (out_channels,), minval=-bound, maxval=bound,
                              dtype=jnp.float32)
    return weights, bias


# ----------------------------------------------------------------------------
# Pure-JAX reference for correctness checking
# ----------------------------------------------------------------------------
def reference_forward(x, weights, bias, *, q, padding, stride, dilation):
    x_pow = jnp.concatenate([x ** i for i in range(1, q + 1)], axis=1)
    out = jax.lax.conv_general_dilated(
        x_pow, weights, window_strides=(stride, stride),
        padding=[(padding, padding), (padding, padding)],
        rhs_dilation=(dilation, dilation),
        dimension_numbers=("NCHW", "OIHW", "NCHW"))
    return out + bias[None, :, None, None]


if __name__ == "__main__":
    # module config (defaults: learnable=False, max_shift=0, full_mode=False)
    N, C, H, W = 2, 4, 16, 16
    OUT_C = 8
    K = 3
    Q = 3
    PAD, STRIDE, DIL = 1, 1, 1

    key = jax.random.PRNGKey(0)
    k_x, k_p = jax.random.split(key)
    x = jax.random.normal(k_x, (N, C, H, W), dtype=jnp.float32)
    weights, bias = init_params(k_p, C, OUT_C, K, Q)

    y_ref = jax.block_until_ready(
        reference_forward(x, weights, bias, q=Q, padding=PAD, stride=STRIDE,
                          dilation=DIL))

    # Accurate path (f32 MXU operands) — validation-grade precision.
    y_f32 = superonn2d_forward(x, weights, bias, q=Q, kernel_size=K, padding=PAD,
                               stride=STRIDE, dilation=DIL,
                               mxu_dtype=jnp.float32)
    y_f32 = jax.block_until_ready(y_f32)
    np.testing.assert_allclose(np.asarray(y_f32), np.asarray(y_ref),
                               rtol=2e-2, atol=5e-2)

    # Fast path (bf16 patch stream + bf16 MXU operands, f32 accumulate).
    # Tolerance sized for bf16 operand rounding (~|y| * q * 2**-8 + cancellation).
    y_bf16 = superonn2d_forward(x, weights, bias, q=Q, kernel_size=K, padding=PAD,
                                stride=STRIDE, dilation=DIL,
                                mxu_dtype=jnp.bfloat16)
    y_bf16 = jax.block_until_ready(y_bf16)
    np.testing.assert_allclose(np.asarray(y_bf16), np.asarray(y_ref),
                               rtol=5e-2, atol=2e-1)

    print("KERNEL_OK")
</pallas_src>

<mosaic_0001>
module attributes {stable_mosaic.version = 11 : i64} {
  func.func @_superonn_kernel(%arg0: i32, %arg1: i32, %arg2: memref<256x128xf32, #tpu.memory_space<vmem>>, %arg3: memref<3x128x128xf32, #tpu.memory_space<vmem>>, %arg4: memref<1x128xf32, #tpu.memory_space<vmem>>, %arg5: memref<256x128xf32, #tpu.memory_space<vmem>>, %arg6: memref<3x256x128xf32, #tpu.memory_space<vmem>>) attributes {dimension_semantics = [#tpu.dimension_semantics<parallel>, #tpu.dimension_semantics<arbitrary>], iteration_bounds = array<i64: 2, 1>, scalar_prefetch = 0 : i64, scratch_operands = 1 : i64, tpu.core_type = #tpu.core_type<tc>, window_params = [{transform_indices = @transform_0, window_bounds = array<i64: 256, 128>}, {transform_indices = @transform_1, window_bounds = array<i64: 3, 128, 128>}, {transform_indices = @transform_2, window_bounds = array<i64: 1, 128>}, {transform_indices = @transform_3, window_bounds = array<i64: 256, 128>}]} {
    %c0_i32 = arith.constant 0 : i32
    %0 = arith.cmpi eq, %arg1, %c0_i32 : i32
    %1 = arith.extui %0 : i1 to i32
    %c0_i32_0 = arith.constant 0 : i32
    %2 = arith.cmpi ne, %1, %c0_i32_0 : i32
    scf.if %2 {
      %c0_22 = arith.constant 0 : index
      %c0_23 = arith.constant 0 : index
      %24 = vector.load %arg2[%c0_22, %c0_23] : memref<256x128xf32, #tpu.memory_space<vmem>>, vector<256x128xf32>
      %c0_24 = arith.constant 0 : index
      %c0_25 = arith.constant 0 : index
      %c0_26 = arith.constant 0 : index
      %25 = vector.load %arg6[%c0_24, %c0_25, %c0_26] : memref<3x256x128xf32, #tpu.memory_space<vmem>>, vector<1x256x128xf32>
      %26 = vector.shape_cast %25 : vector<1x256x128xf32> to vector<256x128xf32>
      %27 = vector.shape_cast %24 : vector<256x128xf32> to vector<1x256x128xf32>
      tpu.vector_store %arg6[%c0_24, %c0_25, %c0_26], %27 {strides = array<i32>} : memref<3x256x128xf32, #tpu.memory_space<vmem>>, vector<1x256x128xf32>,
      %28 = arith.mulf %24, %24 : vector<256x128xf32>
      %c1_27 = arith.constant 1 : index
      %c0_28 = arith.constant 0 : index
      %c0_29 = arith.constant 0 : index
      %29 = vector.load %arg6[%c1_27, %c0_28, %c0_29] : memref<3x256x128xf32, #tpu.memory_space<vmem>>, vector<1x256x128xf32>
      %30 = vector.shape_cast %29 : vector<1x256x128xf32> to vector<256x128xf32>
      %31 = vector.shape_cast %28 : vector<256x128xf32> to vector<1x256x128xf32>
      tpu.vector_store %arg6[%c1_27, %c0_28, %c0_29], %31 {strides = array<i32>} : memref<3x256x128xf32, #tpu.memory_space<vmem>>, vector<1x256x128xf32>,
      %32 = arith.mulf %28, %24 : vector<256x128xf32>
      %c2_30 = arith.constant 2 : index
      %c0_31 = arith.constant 0 : index
      %c0_32 = arith.constant 0 : index
      %33 = vector.load %arg6[%c2_30, %c0_31, %c0_32] : memref<3x256x128xf32, #tpu.memory_space<vmem>>, vector<1x256x128xf32>
      %34 = vector.shape_cast %33 : vector<1x256x128xf32> to vector<256x128xf32>
      %35 = vector.shape_cast %32 : vector<256x128xf32> to vector<1x256x128xf32>
      tpu.vector_store %arg6[%c2_30, %c0_31, %c0_32], %35 {strides = array<i32>} : memref<3x256x128xf32, #tpu.memory_space<vmem>>, vector<1x256x128xf32>,
    } else {
    }
    %c0 = arith.constant 0 : index
    %c0_1 = arith.constant 0 : index
    %c0_2 = arith.constant 0 : index
    %3 = vector.load %arg6[%c0, %c0_1, %c0_2] : memref<3x256x128xf32, #tpu.memory_space<vmem>>, vector<1x256x128xf32>
    %4 = vector.shape_cast %3 : vector<1x256x128xf32> to vector<256x128xf32>
    %c0_3 = arith.constant 0 : index
    %c0_4 = arith.constant 0 : index
    %c0_5 = arith.constant 0 : index
    %5 = vector.load %arg3[%c0_3, %c0_4, %c0_5] : memref<3x128x128xf32, #tpu.memory_space<vmem>>, vector<1x128x128xf32>
    %6 = vector.shape_cast %5 : vector<1x128x128xf32> to vector<128x128xf32>
    %cst = arith.constant dense<0.000000e+00> : vector<256x128xf32>
    %7 = tpu.matmul %4, %6, %cst {dimension_numbers = #tpu.dot_dimension_numbers<[1], [0], [0], [1], [0, 0, 1, 1], [], []>} : vector<256x128xf32>, vector<128x128xf32>, vector<256x128xf32> -> vector<256x128xf32>
    %c1 = arith.constant 1 : index
    %c0_6 = arith.constant 0 : index
    %c0_7 = arith.constant 0 : index
    %8 = vector.load %arg6[%c1, %c0_6, %c0_7] : memref<3x256x128xf32, #tpu.memory_space<vmem>>, vector<1x256x128xf32>
    %9 = vector.shape_cast %8 : vector<1x256x128xf32> to vector<256x128xf32>
    %c1_8 = arith.constant 1 : index
    %c0_9 = arith.constant 0 : index
    %c0_10 = arith.constant 0 : index
    %10 = vector.load %arg3[%c1_8, %c0_9, %c0_10] : memref<3x128x128xf32, #tpu.memory_space<vmem>>, vector<1x128x128xf32>
    %11 = vector.shape_cast %10 : vector<1x128x128xf32> to vector<128x128xf32>
    %cst_11 = arith.constant dense<0.000000e+00> : vector<256x128xf32>
    %12 = tpu.matmul %9, %11, %cst_11 {dimension_numbers = #tpu.dot_dimension_numbers<[1], [0], [0], [1], [0, 0, 1, 1], [], []>} : vector<256x128xf32>, vector<128x128xf32>, vector<256x128xf32> -> vector<256x128xf32>
    %13 = arith.addf %7, %12 : vector<256x128xf32>
    %c2 = arith.constant 2 : index
    %c0_12 = arith.constant 0 : index
    %c0_13 = arith.constant 0 : index
    %14 = vector.load %arg6[%c2, %c0_12, %c0_13] : memref<3x256x128xf32, #tpu.memory_space<vmem>>, vector<1x256x128xf32>
    %15 = vector.shape_cast %14 : vector<1x256x128xf32> to vector<256x128xf32>
    %c2_14 = arith.constant 2 : index
    %c0_15 = arith.constant 0 : index
    %c0_16 = arith.constant 0 : index
    %16 = vector.load %arg3[%c2_14, %c0_15, %c0_16] : memref<3x128x128xf32, #tpu.memory_space<vmem>>, vector<1x128x128xf32>
    %17 = vector.shape_cast %16 : vector<1x128x128xf32> to vector<128x128xf32>
    %cst_17 = arith.constant dense<0.000000e+00> : vector<256x128xf32>
    %18 = tpu.matmul %15, %17, %cst_17 {dimension_numbers = #tpu.dot_dimension_numbers<[1], [0], [0], [1], [0, 0, 1, 1], [], []>} : vector<256x128xf32>, vector<128x128xf32>, vector<256x128xf32> -> vector<256x128xf32>
    %19 = arith.addf %13, %18 : vector<256x128xf32>
    %c0_18 = arith.constant 0 : index
    %c0_19 = arith.constant 0 : index
    %20 = vector.load %arg4[%c0_18, %c0_19] : memref<1x128xf32, #tpu.memory_space<vmem>>, vector<1x128xf32>
    %21 = vector.broadcast %20 : vector<1x128xf32> to vector<256x128xf32>
    %22 = arith.addf %19, %21 : vector<256x128xf32>
    %c0_20 = arith.constant 0 : index
    %c0_21 = arith.constant 0 : index
    %23 = vector.load %arg5[%c0_20, %c0_21] : memref<256x128xf32, #tpu.memory_space<vmem>>, vector<256x128xf32>
    tpu.vector_store %arg5[%c0_20, %c0_21], %22 {strides = array<i32>} : memref<256x128xf32, #tpu.memory_space<vmem>>, vector<256x128xf32>,
    return
  }
  func.func @transform_0(%arg0: i32, %arg1: i32) -> (i32, i32) {
    %c0_i32 = arith.constant 0 : i32
    %c0_i32_0 = arith.constant 0 : i32
    return %arg0, %c0_i32 : i32, i32
  }
  func.func @transform_1(%arg0: i32, %arg1: i32) -> (i32, i32, i32) {
    %c0_i32 = arith.constant 0 : i32
    %c0_i32_0 = arith.constant 0 : i32
    %c0_i32_1 = arith.constant 0 : i32
    return %c0_i32, %c0_i32_0, %arg1 : i32, i32, i32
  }
  func.func @transform_2(%arg0: i32, %arg1: i32) -> (i32, i32) {
    %c0_i32 = arith.constant 0 : i32
    %c0_i32_0 = arith.constant 0 : i32
    return %c0_i32, %arg1 : i32, i32
  }
  func.func @transform_3(%arg0: i32, %arg1: i32) -> (i32, i32) {
    %c0_i32 = arith.constant 0 : i32
    return %arg0, %arg1 : i32, i32
  }
}

</mosaic_0001>

<bundles_post_ra>
// kernel: tpu_custom_call.1
= control target key start
LH: loop header
LB: loop body
LE: loop exit
PB: predicated region body
PF: predicated region fallthrough
CT: control target
= control target key end

     0   :  { %s1990_s0 = inlined_call_operand.hbm [shape: f32[512,128], index: 0, kind: input, shape index: {}]   ;;  %s1991_s1 = inlined_call_operand.hbm [shape: f32[3,128,128], index: 1, kind: input, shape index: {}]   ;;  %s1992_s2 = inlined_call_operand.vmem [shape: f32[1,128], index: 2, kind: input, shape index: {}]   ;;  %s1993_s3 = inlined_call_operand.hbm [shape: f32[512,128], index: 3, kind: output, shape index: {}]  }
   0x1   :  { %1995 = sst [smem:[#allocation12_spill]] %s1991_s1 }
   0x2   :  { %8 = vsyncpa [#allocation4], 0 }
   0x3   :  { %10 = vsyncpa [#allocation4 + $0x1], 0 }
   0x4   :  { %11 = vsyncpa [#allocation7], 0 }
   0x5   :  { %12 = vsyncpa [#allocation5], 0 }
   0x6   :  { %14 = vsyncpa [#allocation5 + $0x1], 0  ;;  %s1473_s12 = smov 0   ;;  %s1475_s13 = smov 0  }
   0x7   :  { %s1477_s14 = smov 0   ;;  %s1479_s15 = smov 0  }
   0x8   :  { %s1481_s16 = smov 0   ;;  %s1483_s17 = smov 0  }
   0x9 LB: > { %s1154_s18 = sadd.s32 4294967295, %s1446_s17   ;;  %s1155_s19 = sadd.s32 4294967294, %s1446_s17   ;;  %s1446_s17 = sphi %s1483_s17, %s20_s17   ;;  %s1442_s16 = sphi %s1481_s16, %s2009_s16   ;;  %s1438_s15 = sphi %s1479_s15, %s2008_s15   ;;  %s1434_s14 = sphi %s1477_s14, %s2007_s14   ;;  %s1430_s13 = sphi %s1475_s13, %s2006_s13   ;;  %s1426_s12 = sphi %s1473_s12, %s2005_s12  }
   0xa   : > { %p52_p0 = scmp.ne.s32.totalorder %s1430_s13, %s1426_s12  ;;  %p1507_p1 = scmp.eq.s32.totalorder %s1154_s18, 0 }
   0xb   : > { %p1511_p2 = scmp.eq.s32.totalorder %s1154_s18, 1  ;;  %p136_p3 = scmp.eq.s32.totalorder %s1155_s19, 1 }
   0xc   : > { %p1517_p4 = por %p1507_p1, %p52_p0  ;;  %p1156_p5 = scmp.ge.s32.totalorder %s1446_s17, 1 }
   0xd   : > { %p1522_p6 = por %p136_p3, %p52_p0  ;;  %p143_p7 = scmp.lt.s32.totalorder %s1446_s17, 3 }
   0xe   : > { %s2000_s1 = sld [smem:[#allocation12_spill]]  ;;  %s1448_s28 = smov [#allocation6]  }
   0xf   : > { %p1530_p8 = pnand %p1156_p5, %p143_p7  ;;  %s158_s29 = sshll.u32 %s1448_s28, 4  ;;  %s159_s29 = int_to_ptr.vmem [resolvable:$true] %s158_s29 }
  0x10   : > { %p1159_p11 = scmp.ge.s32.totalorder %s1446_s17, 2  ;;  %s1994_s30 = smov 128  }
  0x11   : > { %p1230_p9 = pneg %p1530_p8  ;;  %s1450_s4 = smov 8  }
  0x12   : > { %s32_s5 = sadd.s32 1, %s1442_s16  ;;  %s39_s6 = sadd.s32 1, %s1434_s14 }
  0x13   : > { %p1231_p10 = pnand %p1230_p9, %p1507_p1  ;;  %p34_p12 = scmp.ge.s32.totalorder %s32_s5, 2 }
  0x14   : > { %s156_s26 = sshll.u32 %s2000_s1, 4  ;;  %p46_p13 = scmp.ne.s32.totalorder %s1434_s14, %s1430_s13  ;;  %s157_s26 = int_to_ptr.hbm [resolvable:$true] %s156_s26 }
  0x15   : > { %1233 = dma.hbm_to_vmem [thread:$0]  (!%p1231_p10), %s157_s26, 6144, %s159_s29, [#allocation7], %s1994_s30, %s1994_s30, %s1450_s4  }
  0x16   : > { %p47_p0 = scmp.eq.s32.totalorder %s1446_s17, 0  ;;  %s2011_s5 = smov (%p34_p12, %s32_s5), 0 }
  0x17   : > { %p1555_p5 = por %p1511_p2, %p46_p13  ;;  %s36_s9 = ssub.s32 %s1442_s16, %s2011_s5 }
  0x18   : > { %p1549_p3 = por %p47_p0, %p46_p13  ;;  %p1243_p7 = scmp.lt.s32.totalorder %s1446_s17, 2 }
  0x19   : > { %p37_p9 = scmp.eq.s32.totalorder %s36_s9, 0  ;;  %s178_s10 = sand.u32 1, %s1434_s14  }
  0x1a   : > { %s1160_s11 = sshll.u32 %s178_s10, 8  ;;  %s1172_s19 = sshll.u32 %s1442_s16, 8 }
  0x1b   : > { %s1564_s18 = scalar_select %p37_p9, %s1434_s14, %s39_s6  }
  0x1c   : > { %s187_s26 = scalar_lea.hbm %s1990_s0, %s1172_s19  ;;  %s182_s28 = scalar_lea.vmem [#allocation3], %s1160_s11 }
  0x1d   : > { %s190_s29 = sshll.u32 %s182_s28, 4  ;;  %s188_s21 = sshll.u32 %s187_s26, 4  ;;  %s191_s29 = int_to_ptr.vmem [resolvable:$true] %s190_s29  ;;  %s189_s21 = int_to_ptr.hbm [resolvable:$true] %s188_s21 }
  0x1e   : > { %p1235_p2 = pnand %p1243_p7, %p1549_p3  ;;  %s179_s30 = scalar_lea.sflag [#allocation4], %s178_s10 }
  0x1f   : > { %s2004_s1 = smov 128   ;;  %202 = sbr.rel (%p1530_p8) target bundleno = 396 (0x18c), region = 32 }
  0x20   : > { %1237 = dma.hbm_to_vmem [thread:$0]  (!%p1235_p2), %s189_s21, 4096, %s191_s29, %s179_s30, %s2004_s1, %s2004_s1, %s1450_s4  }
  0x21   : > { %s1578_s6 = sand.u32 (!%p1530_p8), 1, %s1430_s13  }
  0x22   : > { %s1164_s9 = sshll.u32 (!%p1530_p8), %s1578_s6, 8  ;;  %s205_s11 = scalar_lea.sflag (!%p1530_p8), [#allocation4], %s1578_s6 }
  0x23   : > { %s1584_s7 = scalar_lea.vmem (!%p1530_p8), [#allocation3], %s1164_s9 }
  0x24   : > { %1413 = dma.done.wait (%p1517_p4), %s205_s11, 4096  }
  0x25   : > { %1415 = vsyncadd (%p1517_p4), %s205_s11, 4294963200 }
  0x26   : > { %1417 = dma.done.wait (%p1507_p1), [#allocation7], 6144  }
  0x27   : > { %1419 = vsyncadd (%p1507_p1), [#allocation7], 4294961152  ;;  %v540_v0 = vld [vmem:[#allocation6 + $0xf8] sm:$0xff]  ;;  %v539_v2 = vld [vmem:[#allocation6 + $0xf0] sm:$0xff]  ;;  %s1823_s22 = scalar_lea.vmem [#allocation8], %s1164_s9  ;;  %s1173_s27 = sshll.u32 %s1438_s15, 8 }
  0x28   : > { %v1594_v1 = vld [vmem:[#allocation6 + $0x178] sm:$0xff]  ;;  %1174 = vmatpush.msra.mxu3 %v540_v0  ;;  %v1597_v3 = vld [vmem:[#allocation6 + $0x170] sm:$0xff]  ;;  %541 = vmatpush.msra.mxu0 %v540_v0  ;;  %v538_v5 = vld [vmem:[#allocation6 + $0xe8] sm:$0xff]  ;;  %s1043_s10 = scalar_lea.hbm %s1993_s3, %s1173_s27  ;;  %s1044_s15 = sshll.u32 %s1823_s22, 4  ;;  %s1045_s15 = int_to_ptr.vmem [resolvable:$true] %s1044_s15 }
  0x29   : > { %817 = vmatpush.msra.mxu2 %v1594_v1  ;;  %v1599_v4 = vld [vmem:[#allocation6 + $0x78] sm:$0xff]  ;;  %v1602_v6 = vld [vmem:[#allocation6 + $0x168] sm:$0xff]  ;;  %v1604_v7 = vld [vmem:[#allocation6 + $0x70] sm:$0xff]  ;;  %s1046_s19 = sshll.u32 %s1043_s10, 4  ;;  %s1031_s24 = scalar_lea.sflag [#allocation5], %s1578_s6  ;;  %s1047_s19 = int_to_ptr.hbm [resolvable:$true] %s1046_s19 }
  0x2a   : > { %654 = vmatpush.msra.mxu1 %v1599_v4  ;;  %1175 = vmatpush.msra.mxu3 %v539_v2  ;;  %v1607_v8 = vld [vmem:[#allocation6 + $0x68] sm:$0xff]  ;;  %v537_v9 = vld [vmem:[#allocation6 + $0xe0] sm:$0xff]  ;;  %v536_v12 = vld [vmem:[#allocation6 + $0xd8] sm:$0xff]  ;;  %s1374_s25 = sshra.s32 %s1047_s19, 4  ;;  %s1380_s21 = scalar_lea.hbm %s1993_s3, 512  ;;  %s1375_s25 = int_to_ptr.hbm [resolvable:$true] %s1374_s25 }
  0x2b   : > { %818 = vmatpush.msra.mxu2 %v1597_v3  ;;  %542 = vmatpush.msra.mxu0 %v539_v2  ;;  %v1610_v10 = vld [vmem:[#allocation6 + $0x160] sm:$0xff]  ;;  %v1616_v13 = vld [vmem:[#allocation6 + $0x158] sm:$0xff]  ;;  %v535_v15 = vld [vmem:[#allocation6 + $0xd0] sm:$0xff]  ;;  %s1376_s26 = scalar_lea.hbm %s1375_s25, 256  ;;  %p1381_p10 = scmp.lt.s32.totalorder %s1375_s25, %s1993_s3 }
  0x2c   : > { %655 = vmatpush.msra.mxu1 %v1604_v7  ;;  %1176 = vmatpush.msra.mxu3 %v538_v5  ;;  %v1613_v11 = vld [vmem:[#allocation6 + $0x60] sm:$0xff]  ;;  %v1619_v14 = vld [vmem:[#allocation6 + $0x58] sm:$0xff]  ;;  %v1622_v16 = vld [vmem:[#allocation6 + $0x150] sm:$0xff]  ;;  %p1377_p1 = scmp.ne.s32.totalorder %s1375_s25, %s1376_s26  ;;  %p1382_p12 = scmp.lt.s32.totalorder %s1380_s21, %s1376_s26 }
  0x2d   : > { %819 = vmatpush.msra.mxu2 %v1602_v6  ;;  %543 = vmatpush.msra.mxu0 %v538_v5  ;;  %v1625_v17 = vld [vmem:[#allocation6 + $0x50] sm:$0xff]  ;;  %v534_v18 = vld [vmem:[#allocation6 + $0xc8] sm:$0xff]  ;;  %v533_v21 = vld [vmem:[#allocation6 + $0xc0] sm:$0xff] }
  0x2e   : > { %656 = vmatpush.msra.mxu1 %v1607_v8  ;;  %1177 = vmatpush.msra.mxu3 %v537_v9  ;;  %v1628_v19 = vld [vmem:[#allocation6 + $0x148] sm:$0xff]  ;;  %v1634_v22 = vld [vmem:[#allocation6 + $0x140] sm:$0xff]  ;;  %v532_v24 = vld [vmem:[#allocation6 + $0xb8] sm:$0xff]  ;;  %p1378_p4 = pnand %p1377_p1, %p1555_p5  ;;  %p1383_p13 = por %p1382_p12, %p1381_p10 }
  0x2f   : > { %820 = vmatpush.msra.mxu2 %v1610_v10  ;;  %544 = vmatpush.msra.mxu0 %v537_v9  ;;  %v1631_v20 = vld [vmem:[#allocation6 + $0x48] sm:$0xff]  ;;  %v1637_v23 = vld [vmem:[#allocation6 + $0x40] sm:$0xff]  ;;  %v1640_v25 = vld [vmem:[#allocation6 + $0x138] sm:$0xff] }
  0x30   : > { %657 = vmatpush.msra.mxu1 %v1613_v11  ;;  %1178 = vmatpush.msra.mxu3 %v536_v12  ;;  %v1643_v26 = vld [vmem:[#allocation6 + $0x38] sm:$0xff]  ;;  %v531_v27 = vld [vmem:[#allocation6 + $0xb0] sm:$0xff]  ;;  %v530_v30 = vld [vmem:[#allocation6 + $0xa8] sm:$0xff]  ;;  %p1379_p8 = pneg %p1378_p4 }
  0x31   : > { %821 = vmatpush.msra.mxu2 %v1616_v13  ;;  %545 = vmatpush.msra.mxu0 %v536_v12  ;;  %v1646_v28 = vld [vmem:[#allocation6 + $0x130] sm:$0xff]  ;;  %v1652_v31 = vld [vmem:[#allocation6 + $0x128] sm:$0xff]  ;;  %v529_v33 = vld [vmem:[#allocation6 + $0xa0] sm:$0xff] }
  0x32   : > { %658 = vmatpush.msra.mxu1 %v1619_v14  ;;  %1179 = vmatpush.msra.mxu3 %v535_v15  ;;  %v1649_v29 = vld [vmem:[#allocation6 + $0x30] sm:$0xff]  ;;  %v1655_v32 = vld [vmem:[#allocation6 + $0x28] sm:$0xff]  ;;  %v1658_v34 = vld [vmem:[#allocation6 + $0x120] sm:$0xff]  ;;  %p1384_p0 = pnand %p1383_p13, %p1379_p8 }
  0x33   : > { %822 = vmatpush.msra.mxu2 %v1622_v16  ;;  %546 = vmatpush.msra.mxu0 %v535_v15  ;;  %v1661_v35 = vld [vmem:[#allocation6 + $0x20] sm:$0xff]  ;;  %v528_v37 = vld [vmem:[#allocation6 + $0x98] sm:$0xff]  ;;  %v527_v40 = vld [vmem:[#allocation6 + $0x90] sm:$0xff] }
  0x34   : > { %659 = vmatpush.msra.mxu1 %v1625_v17  ;;  %1180 = vmatpush.msra.mxu3 %v534_v18  ;;  %v249_v36 = vld [vmem:[%s1584_s7] sm:$0xff]  ;;  %v1665_v38 = vld [vmem:[#allocation6 + $0x118] sm:$0xff]  ;;  %v1671_v41 = vld [vmem:[#allocation6 + $0x110] sm:$0xff] }
  0x35   : > { %823 = vmatpush.msra.mxu2 %v1628_v19  ;;  %547 = vmatpush.msra.mxu0 %v534_v18  ;;  %v1668_v39 = vld [vmem:[#allocation6 + $0x18] sm:$0xff]  ;;  %v313_v42 = vmul.f32 %v249_v36, %v249_v36  ;;  %v1674_v43 = vld [vmem:[#allocation6 + $0x10] sm:$0xff]  ;;  %v1677_v44 = vld [vmem:[%s1584_s7 + $0xc0] sm:$0xff] }
  0x36   : > { %660 = vmatpush.msra.mxu1 %v1631_v20  ;;  %1181 = vmatpush.msra.mxu3 %v533_v21  ;;  %v526_v45 = vld [vmem:[#allocation6 + $0x88] sm:$0xff]  ;;  %v525_v48 = vld [vmem:[#allocation6 + $0x80] sm:$0xff]  ;;  %v1690_v50 = vmul.f32 %v1677_v44, %v1677_v44  ;;  %v251_v58 = vld [vmem:[%s1584_s7 + $0x10] sm:$0xff] }
  0x37   : > { %824 = vmatpush.msra.mxu2 %v1634_v22  ;;  %548 = vmatpush.msra.mxu0 %v533_v21  ;;  %v1680_v46 = vld [vmem:[#allocation6 + $0x108] sm:$0xff]  ;;  %v1686_v49 = vld [vmem:[#allocation6 + $0x100] sm:$0xff]  ;;  %v378_v51 = vmul.f32 %v313_v42, %v249_v36  ;;  %v315_v59 = vmul.f32 %v251_v58, %v251_v58  ;;  %v1711_v60 = vld [vmem:[%s1584_s7 + $0xd0] sm:$0xff] }
  0x38   : > { %661 = vmatpush.msra.mxu1 %v1637_v23  ;;  %1182 = vmatpush.msra.mxu3 %v532_v24  ;;  %v1683_v47 = vld [vmem:[#allocation6 + $0x8] sm:$0xff]  ;;  %v475_v53 = vld [vmem:[#allocation6] sm:$0xff]  ;;  %v1717_v61 = vmul.f32 %v1711_v60, %v1711_v60  ;;  %v252_v63 = vld [vmem:[%s1584_s7 + $0x18] sm:$0xff] }
  0x39   : > { %825 = vmatpush.msra.mxu2 %v1640_v25  ;;  %549 = vmatpush.msra.mxu0 %v532_v24  ;;  %v250_v52 = vld [vmem:[%s1584_s7 + $0x8] sm:$0xff]  ;;  %v380_v62 = vmul.f32 %v315_v59, %v251_v58  ;;  %v316_v0 = vmul.f32 %v252_v63, %v252_v63  ;;  %v1724_v2 = vld [vmem:[%s1584_s7 + $0xd8] sm:$0xff]  ;;  %v1737_v9 = vld [vmem:[%s1584_s7 + $0xe0] sm:$0xff] }
  0x3a   : > { %662 = vmatpush.msra.mxu1 %v1643_v26  ;;  %1183 = vmatpush.msra.mxu3 %v531_v27  ;;  %v314_v54 = vmul.f32 %v250_v52, %v250_v52  ;;  %v1699_v55 = vld [vmem:[%s1584_s7 + $0xc8] sm:$0xff]  ;;  %v255_v21 = vld [vmem:[%s1584_s7 + $0x30] sm:$0xff] }
  0x3b   : > { %826 = vmatpush.msra.mxu2 %v1646_v28  ;;  %550 = vmatpush.msra.mxu0 %v531_v27  ;;  %v1704_v56 = vmul.f32 %v1699_v55, %v1699_v55  ;;  %v381_v5 = vmul.f32 %v316_v0, %v252_v63  ;;  %v258_v27 = vld [vmem:[%s1584_s7 + $0x48] sm:$0xff] }
  0x3c   : > { %663 = vmatpush.msra.mxu1 %v1649_v29  ;;  %1184 = vmatpush.msra.mxu3 %v530_v30  ;;  %v379_v57 = vmul.f32 %v314_v54, %v250_v52 }
  0x3d   : > { %827 = vmatpush.msra.mxu2 %v1652_v31  ;;  %551 = vmatpush.msra.mxu0 %v530_v30  ;;  %v259_v30 = vld [vmem:[%s1584_s7 + $0x50] sm:$0xff] }
  0x3e   : > { %664 = vmatpush.msra.mxu1 %v1655_v32  ;;  %1185 = vmatpush.msra.mxu3 %v529_v33 }
  0x3f   : > { %828 = vmatpush.msra.mxu2 %v1658_v34  ;;  %552 = vmatpush.msra.mxu0 %v529_v33  ;;  %v260_v33 = vld [vmem:[%s1584_s7 + $0x58] sm:$0xff] }
  0x40   : > { %665 = vmatpush.msra.mxu1 %v1661_v35  ;;  %1186 = vmatpush.msra.mxu3 %v528_v37 }
  0x41   : > { %829 = vmatpush.msra.mxu2 %v1665_v38  ;;  %553 = vmatpush.msra.mxu0 %v528_v37 }
  0x42   : > { %666 = vmatpush.msra.mxu1 %v1668_v39  ;;  %1187 = vmatpush.msra.mxu3 %v527_v40 }
  0x43   : > { %830 = vmatpush.msra.mxu2 %v1671_v41  ;;  %554 = vmatpush.msra.mxu0 %v527_v40 }
  0x44   : > { %667 = vmatpush.msra.mxu1 %v1674_v43  ;;  %1188 = vmatpush.msra.mxu3 %v526_v45 }
  0x45   : > { %831 = vmatpush.msra.mxu2 %v1680_v46  ;;  %555 = vmatpush.msra.mxu0 %v526_v45 }
  0x46   : > { %668 = vmatpush.msra.mxu1 %v1683_v47  ;;  %1189 = vmatpush.msra.mxu3 %v525_v48 }
  0x47   : > { %832 = vmatpush.msra.mxu2 %v1686_v49  ;;  %629 = vmatmul.f32.vlgmr.msra.gmra.mxu3 %v1690_v50 }
  0x48   : > { %833 = vmatmul.f32.vlgmr.msra.gmra.mxu2 %v378_v51  ;;  %1190 = vmatpush.msrb.mxu3 %v1599_v4  ;;  %v1730_v4 = vmul.f32 %v1724_v2, %v1724_v2 }
  0x49   : > { %556 = vmatpush.msra.mxu0 %v525_v48  ;;  %669 = vmatpush.msra.mxu1 %v475_v53 }
  0x4a   : > { %557 = vmatmul.f32.vlgmr.msra.gmra.mxu0 %v313_v42  ;;  %1191 = vmatpush.msrb.mxu3 %v1604_v7  ;;  %v253_v7 = vld [vmem:[%s1584_s7 + $0x20] sm:$0xff]  ;;  %v263_v42 = vld [vmem:[%s1584_s7 + $0x70] sm:$0xff] }
  0x4b   : > { %670 = vmatmul.f32.vlgmr.msra.gmra.mxu1 %v249_v36  ;;  %v261_v36 = vld [vmem:[%s1584_s7 + $0x60] sm:$0xff] }
  0x4c   : > { %1192 = vmatpush.msrb.mxu3 %v1607_v8  ;;  %v317_v8 = vmul.f32 %v253_v7, %v253_v7  ;;  %v325_v37 = vmul.f32 %v261_v36, %v261_v36 }
  0x4e   : > { %1193 = vmatpush.msrb.mxu3 %v1613_v11  ;;  %v1743_v11 = vmul.f32 %v1737_v9, %v1737_v9  ;;  %v382_v12 = vmul.f32 %v317_v8, %v253_v7 }
  0x4f   : > { %632 = vmatmul.f32.gmra.mxu3 %v1704_v56 }
  0x50   : > { %836 = vmatmul.f32.gmra.mxu2 %v379_v57  ;;  %1194 = vmatpush.msrb.mxu3 %v1619_v14  ;;  %v254_v14 = vld [vmem:[%s1584_s7 + $0x28] sm:$0xff] }
  0x51   : > { %v318_v15 = vmul.f32 %v254_v14, %v254_v14 }
  0x52   : > { %560 = vmatmul.f32.gmra.mxu0 %v314_v54  ;;  %1195 = vmatpush.msrb.mxu3 %v1625_v17  ;;  %v1749_v17 = vld [vmem:[%s1584_s7 + $0xe8] sm:$0xff] }
  0x53   : > { %673 = vmatmul.f32.gmra.mxu1 %v250_v52  ;;  %v1755_v18 = vmul.f32 %v1749_v17, %v1749_v17  ;;  %v402_v52 = vmul.f32 %v1690_v50, %v1677_v44  ;;  %v266_v54 = vld [vmem:[%s1584_s7 + $0x88] sm:$0xff] }
  0x54   : > { %1196 = vmatpush.msrb.mxu3 %v1631_v20  ;;  %v383_v20 = vmul.f32 %v318_v15, %v254_v14 }
  0x56   : > { %1197 = vmatpush.msrb.mxu3 %v1637_v23  ;;  %v1762_v23 = vld [vmem:[%s1584_s7 + $0xf0] sm:$0xff] }
  0x57   : > { %635 = vmatmul.f32.gmra.mxu3 %v1717_v61 }
  0x58   : > { %839 = vmatmul.f32.gmra.mxu2 %v380_v62  ;;  %1198 = vmatpush.msrb.mxu3 %v1643_v26  ;;  %v257_v26 = vld [vmem:[%s1584_s7 + $0x40] sm:$0xff] }
  0x5a   : > { %563 = vmatmul.f32.gmra.mxu0 %v315_v59  ;;  %1199 = vmatpush.msrb.mxu3 %v1649_v29  ;;  %v330_v59 = vmul.f32 %v266_v54, %v266_v54 }
  0x5b   : > { %676 = vmatmul.f32.gmra.mxu1 %v251_v58 }
  0x5c   : > { %1200 = vmatpush.msrb.mxu3 %v1655_v32  ;;  %v395_v50 = vmul.f32 %v330_v59, %v266_v54 }
  0x5e   : > { %1201 = vmatpush.msrb.mxu3 %v1661_v35 }
  0x5f   : > { %638 = vmatmul.f32.gmra.mxu3 %v1730_v4 }
  0x60   : > { %842 = vmatmul.f32.gmra.mxu2 %v381_v5  ;;  %1202 = vmatpush.msrb.mxu3 %v1668_v39  ;;  %v262_v39 = vld [vmem:[%s1584_s7 + $0x68] sm:$0xff] }
  0x61   : > { %v326_v40 = vmul.f32 %v262_v39, %v262_v39 }
  0x62   : > { %566 = vmatmul.f32.gmra.mxu0 %v316_v0  ;;  %1203 = vmatpush.msrb.mxu3 %v1674_v43  ;;  %v327_v43 = vmul.f32 %v263_v42, %v263_v42 }
  0x63   : > { %679 = vmatmul.f32.gmra.mxu1 %v252_v63  ;;  %v1813_v63 = vld [vmem:[%s1992_s2] ss:$0 sm:$0xff] }
  0x64   : > { %1204 = vmatpush.msrb.mxu3 %v1683_v47  ;;  %v392_v45 = vmul.f32 %v327_v43, %v263_v42 }
  0x66   : > { %1205 = vmatpush.msrb.mxu3 %v475_v53 }
  0x67   : > { %641 = vmatmul.f32.gmra.mxu3 %v1743_v11 }
  0x68   : > { %845 = vmatmul.f32.gmra.mxu2 %v382_v12  ;;  %1206 = vmatpush.msra.mxu3 %v1594_v1  ;;  %v319_v1 = vmul.f32 %v255_v21, %v255_v21 }
  0x6a   : > { %569 = vmatmul.f32.gmra.mxu0 %v317_v8  ;;  %1207 = vmatpush.msra.mxu3 %v1597_v3  ;;  %v1768_v3 = vmul.f32 %v1762_v23, %v1762_v23  ;;  %v267_v8 = vld [vmem:[%s1584_s7 + $0x90] sm:$0xff] }
  0x6b   : > { %682 = vmatmul.f32.gmra.mxu1 %v253_v7  ;;  %v403_v7 = vmul.f32 %v1704_v56, %v1699_v55 }
  0x6c   : > { %1208 = vmatpush.msra.mxu3 %v1602_v6  ;;  %v384_v6 = vmul.f32 %v319_v1, %v255_v21 }
  0x6e   : > { %1209 = vmatpush.msra.mxu3 %v1610_v10  ;;  %v256_v10 = vld [vmem:[%s1584_s7 + $0x38] sm:$0xff] }
  0x6f   : > { %644 = vmatmul.f32.gmra.mxu3 %v1755_v18  ;;  %v320_v24 = vmul.f32 %v256_v10, %v256_v10 }
  0x70   : > { %848 = vmatmul.f32.gmra.mxu2 %v383_v20  ;;  %1210 = vmatpush.msra.mxu3 %v1616_v13  ;;  %v1775_v13 = vld [vmem:[%s1584_s7 + $0xf8] sm:$0xff]  ;;  %v331_v20 = vmul.f32 %v267_v8, %v267_v8 }
  0x72   : > { %572 = vmatmul.f32.gmra.mxu0 %v318_v15  ;;  %1211 = vmatpush.msra.mxu3 %v1622_v16  ;;  %v1781_v16 = vmul.f32 %v1775_v13, %v1775_v13 }
  0x73   : > { %685 = vmatmul.f32.gmra.mxu1 %v254_v14 }
  0x74   : > { %1212 = vmatpush.msra.mxu3 %v1628_v19  ;;  %v385_v19 = vmul.f32 %v320_v24, %v256_v10 }
  0x76   : > { %1213 = vmatpush.msra.mxu3 %v1634_v22  ;;  %v321_v22 = vmul.f32 %v257_v26, %v257_v26 }
  0x77   : > { %647 = vmatmul.f32.gmra.mxu3 %v1768_v3 }
  0x78   : > { %851 = vmatmul.f32.gmra.mxu2 %v384_v6  ;;  %1214 = vmatpush.msra.mxu3 %v1640_v25  ;;  %v386_v25 = vmul.f32 %v321_v22, %v257_v26  ;;  %v396_v6 = vmul.f32 %v331_v20, %v267_v8 }
  0x7a   : > { %575 = vmatmul.f32.gmra.mxu0 %v319_v1  ;;  %1215 = vmatpush.msra.mxu3 %v1646_v28  ;;  %v322_v28 = vmul.f32 %v258_v27, %v258_v27 }
  0x7b   : > { %688 = vmatmul.f32.gmra.mxu1 %v255_v21 }
  0x7c   : > { %1216 = vmatpush.msra.mxu3 %v1652_v31  ;;  %v387_v29 = vmul.f32 %v322_v28, %v258_v27  ;;  %v323_v31 = vmul.f32 %v259_v30, %v259_v30 }
  0x7e   : > { %1217 = vmatpush.msra.mxu3 %v1658_v34  ;;  %v388_v32 = vmul.f32 %v323_v31, %v259_v30  ;;  %v324_v34 = vmul.f32 %v260_v33, %v260_v33 }
  0x7f   : > { %650 = vmatmul.f32.gmra.mxu3 %v1781_v16 }
  0x80   : > { %854 = vmatmul.f32.gmra.mxu2 %v385_v19  ;;  %1218 = vmatpush.msra.mxu3 %v1665_v38  ;;  %v389_v35 = vmul.f32 %v324_v34, %v260_v33  ;;  %v390_v38 = vmul.f32 %v325_v37, %v261_v36 }
  0x82   : > { %578 = vmatmul.f32.gmra.mxu0 %v320_v24  ;;  %1219 = vmatpush.msra.mxu3 %v1671_v41  ;;  %v391_v41 = vmul.f32 %v326_v40, %v262_v39  ;;  %v268_v24 = vld [vmem:[%s1584_s7 + $0x98] sm:$0xff] }
  0x83   : > { %691 = vmatmul.f32.gmra.mxu1 %v256_v10  ;;  %v404_v10 = vmul.f32 %v1717_v61, %v1711_v60  ;;  %v269_v61 = vld [vmem:[%s1584_s7 + $0xa0] sm:$0xff] }
  0x84   : > { %1220 = vmatpush.msra.mxu3 %v1680_v46  ;;  %v264_v46 = vld [vmem:[%s1584_s7 + $0x78] sm:$0xff] }
  0x85   : > { %v328_v47 = vmul.f32 %v264_v46, %v264_v46 }
  0x86   : > { %1221 = vmatpush.msra.mxu3 %v1686_v49  ;;  %v265_v49 = vld [vmem:[%s1584_s7 + $0x80] sm:$0xff] }
  0x87   : > { %742 = vmatmul.f32.vlgmr.msrb.gmra.mxu3 %v1677_v44  ;;  %v393_v48 = vmul.f32 %v328_v47, %v264_v46  ;;  %v329_v51 = vmul.f32 %v265_v49, %v265_v49 }
  0x88   : > { %857 = vmatmul.f32.gmra.mxu2 %v386_v25  ;;  %v332_v25 = vmul.f32 %v268_v24, %v268_v24 }
  0x89   : > { %v394_v53 = vmul.f32 %v329_v51, %v265_v49 }
  0x8a   : > { %581 = vmatmul.f32.gmra.mxu0 %v321_v22 }
  0x8b   : > { %694 = vmatmul.f32.gmra.mxu1 %v257_v26 }
  0x8f   : > { %745 = vmatmul.f32.gmra.mxu3 %v1699_v55 }
  0x90   : > { %860 = vmatmul.f32.gmra.mxu2 %v387_v29 }
  0x92   : > { %584 = vmatmul.f32.gmra.mxu0 %v322_v28 }
  0x93   : > { %697 = vmatmul.f32.gmra.mxu1 %v258_v27 }
  0x97   : > { %748 = vmatmul.f32.gmra.mxu3 %v1711_v60  ;;  %v405_v60 = vmul.f32 %v1730_v4, %v1724_v2  ;;  %v270_v4 = vld [vmem:[%s1584_s7 + $0xa8] sm:$0xff] }
  0x98   : > { %863 = vmatmul.f32.gmra.mxu2 %v388_v32 }
  0x9a   : > { %587 = vmatmul.f32.gmra.mxu0 %v323_v31  ;;  %v397_v31 = vmul.f32 %v332_v25, %v268_v24 }
  0x9b   : > { %700 = vmatmul.f32.gmra.mxu1 %v259_v30 }
  0x9f   : > { %751 = vmatmul.f32.gmra.mxu3 %v1724_v2  ;;  %v406_v2 = vmul.f32 %v1743_v11, %v1737_v9  ;;  %v271_v11 = vld [vmem:[%s1584_s7 + $0xb0] sm:$0xff] }
  0xa0   : > { %866 = vmatmul.f32.gmra.mxu2 %v389_v35  ;;  %v333_v35 = vmul.f32 %v269_v61, %v269_v61 }
  0xa2   : > { %590 = vmatmul.f32.gmra.mxu0 %v324_v34 }
  0xa3   : > { %703 = vmatmul.f32.gmra.mxu1 %v260_v33 }
  0xa7   : > { %754 = vmatmul.f32.gmra.mxu3 %v1737_v9  ;;  %v407_v9 = vmul.f32 %v1755_v18, %v1749_v17  ;;  %v272_v18 = vld [vmem:[%s1584_s7 + $0xb8] sm:$0xff] }
  0xa8   : > { %869 = vmatmul.f32.gmra.mxu2 %v390_v38 }
  0xaa   : > { %593 = vmatmul.f32.gmra.mxu0 %v325_v37 }
  0xab   : > { %706 = vmatmul.f32.gmra.mxu1 %v261_v36 }
  0xaf   : > { %757 = vmatmul.f32.gmra.mxu3 %v1749_v17  ;;  %v408_v17 = vmul.f32 %v1768_v3, %v1762_v23 }
  0xb0   : > { %872 = vmatmul.f32.gmra.mxu2 %v391_v41 }
  0xb2   : > { %596 = vmatmul.f32.gmra.mxu0 %v326_v40  ;;  %v398_v40 = vmul.f32 %v333_v35, %v269_v61 }
  0xb3   : > { %709 = vmatmul.f32.gmra.mxu1 %v262_v39 }
  0xb7   : > { %760 = vmatmul.f32.gmra.mxu3 %v1762_v23  ;;  %v409_v23 = vmul.f32 %v1781_v16, %v1775_v13 }
  0xb8   : > { %875 = vmatmul.f32.gmra.mxu2 %v392_v45  ;;  %v334_v45 = vmul.f32 %v270_v4, %v270_v4 }
  0xba   : > { %599 = vmatmul.f32.gmra.mxu0 %v327_v43 }
  0xbb   : > { %712 = vmatmul.f32.gmra.mxu1 %v263_v42 }
  0xbf   : > { %763 = vmatmul.f32.gmra.mxu3 %v1775_v13 }
  0xc0   : > { %878 = vmatmul.f32.gmra.mxu2 %v393_v48 }
  0xc2   : > { %602 = vmatmul.f32.gmra.mxu0 %v328_v47 }
  0xc3   : > { %715 = vmatmul.f32.gmra.mxu1 %v264_v46 }
  0xc7   : > { %v558_v57 = vpop.f32.mrf.mxu0  ;;  %905 = vmatmul.f32.vlgmr.msra.gmra.mxu3 %v402_v52 }
  0xc8   : > { %881 = vmatmul.f32.gmra.mxu2 %v394_v53  ;;  %v671_v58 = vpop.f32.mrf.mxu1 }
  0xc9   : > { %v672_v62 = vadd.f32 %v671_v58, %v558_v57  ;;  %v335_v57 = vmul.f32 %v271_v11, %v271_v11 }
  0xca   : > { %605 = vmatmul.f32.gmra.mxu0 %v329_v51  ;;  %v1815_v0 = vpop.f32.mrf.mxu3  ;;  %v399_v51 = vmul.f32 %v334_v45, %v270_v4 }
  0xcb   : > { %v834_v5 = vpop.f32.mrf.mxu2  ;;  %718 = vmatmul.f32.gmra.mxu1 %v265_v49 }
  0xcc   : > { %v930_v44 = vadd.f32 %v834_v5, %v672_v62 }
  0xce   : > { %v966_v12 = vadd.f32 %v1813_v63, %v930_v44  ;;  %v400_v44 = vmul.f32 %v335_v57, %v271_v11 }
  0xcf   : > { %v561_v14 = vpop.f32.mrf.mxu0  ;;  %908 = vmatmul.f32.gmra.mxu3 %v403_v7 }
  0xd0   : > { %998 = vst [vmem:[%s1823_s22] sm:$0xff] %v966_v12  ;;  %884 = vmatmul.f32.gmra.mxu2 %v395_v50  ;;  %v674_v15 = vpop.f32.mrf.mxu1  ;;  %v336_v12 = vmul.f32 %v272_v18, %v272_v18 }
  0xd1   : > { %v675_v21 = vadd.f32 %v674_v15, %v561_v14 }
  0xd2   : > { %608 = vmatmul.f32.gmra.mxu0 %v330_v59  ;;  %v1826_v1 = vpop.f32.mrf.mxu3 }
  0xd3   : > { %v837_v55 = vpop.f32.mrf.mxu2  ;;  %721 = vmatmul.f32.gmra.mxu1 %v266_v54 }
  0xd4   : > { %v931_v56 = vadd.f32 %v837_v55, %v675_v21  ;;  %v401_v55 = vmul.f32 %v336_v12, %v272_v18 }
  0xd6   : > { %v967_v19 = vadd.f32 %v1813_v63, %v931_v56 }
  0xd7   : > { %v564_v26 = vpop.f32.mrf.mxu0  ;;  %911 = vmatmul.f32.gmra.mxu3 %v404_v10 }
  0xd8   : > { %999 = vst [vmem:[%s1823_s22 + $0x8] sm:$0xff] %v967_v19  ;;  %887 = vmatmul.f32.gmra.mxu2 %v396_v6  ;;  %v677_v22 = vpop.f32.mrf.mxu1 }
  0xd9   : > { %v678_v27 = vadd.f32 %v677_v22, %v564_v26 }
  0xda   : > { %611 = vmatmul.f32.gmra.mxu0 %v331_v20  ;;  %v1833_v28 = vpop.f32.mrf.mxu3 }
  0xdb   : > { %v840_v29 = vpop.f32.mrf.mxu2  ;;  %724 = vmatmul.f32.gmra.mxu1 %v267_v8 }
  0xdc   : > { %v932_v30 = vadd.f32 %v840_v29, %v678_v27 }
  0xde   : > { %v968_v32 = vadd.f32 %v1813_v63, %v932_v30 }
  0xdf   : > { %v567_v33 = vpop.f32.mrf.mxu0  ;;  %914 = vmatmul.f32.gmra.mxu3 %v405_v60 }
  0xe0   : > { %1000 = vst [vmem:[%s1823_s22 + $0x10] sm:$0xff] %v968_v32  ;;  %890 = vmatmul.f32.gmra.mxu2 %v397_v31  ;;  %v680_v34 = vpop.f32.mrf.mxu1 }
  0xe1   : > { %v681_v36 = vadd.f32 %v680_v34, %v567_v33 }
  0xe2   : > { %614 = vmatmul.f32.gmra.mxu0 %v332_v25  ;;  %v1840_v37 = vpop.f32.mrf.mxu3 }
  0xe3   : > { %v843_v38 = vpop.f32.mrf.mxu2  ;;  %727 = vmatmul.f32.gmra.mxu1 %v268_v24 }
  0xe4   : > { %v933_v39 = vadd.f32 %v843_v38, %v681_v36 }
  0xe6   : > { %v969_v41 = vadd.f32 %v1813_v63, %v933_v39 }
  0xe7   : > { %v570_v42 = vpop.f32.mrf.mxu0  ;;  %917 = vmatmul.f32.gmra.mxu3 %v406_v2 }
  0xe8   : > { %1001 = vst [vmem:[%s1823_s22 + $0x18] sm:$0xff] %v969_v41  ;;  %893 = vmatmul.f32.gmra.mxu2 %v398_v40  ;;  %v683_v43 = vpop.f32.mrf.mxu1 }
  0xe9   : > { %v684_v46 = vadd.f32 %v683_v43, %v570_v42 }
  0xea   : > { %617 = vmatmul.f32.gmra.mxu0 %v333_v35  ;;  %v1847_v47 = vpop.f32.mrf.mxu3 }
  0xeb   : > { %v846_v48 = vpop.f32.mrf.mxu2  ;;  %730 = vmatmul.f32.gmra.mxu1 %v269_v61 }
  0xec   : > { %v934_v49 = vadd.f32 %v846_v48, %v684_v46 }
  0xee   : > { %v970_v52 = vadd.f32 %v1813_v63, %v934_v49 }
  0xef   : > { %v573_v53 = vpop.f32.mrf.mxu0  ;;  %920 = vmatmul.f32.gmra.mxu3 %v407_v9 }
  0xf0   : > { %1002 = vst [vmem:[%s1823_s22 + $0x20] sm:$0xff] %v970_v52  ;;  %896 = vmatmul.f32.gmra.mxu2 %v399_v51  ;;  %v686_v54 = vpop.f32.mrf.mxu1 }
  0xf1   : > { %v687_v58 = vadd.f32 %v686_v54, %v573_v53 }
  0xf2   : > { %620 = vmatmul.f32.gmra.mxu0 %v334_v45  ;;  %v1854_v59 = vpop.f32.mrf.mxu3 }
  0xf3   : > { %v849_v62 = vpop.f32.mrf.mxu2  ;;  %733 = vmatmul.f32.gmra.mxu1 %v270_v4 }
  0xf4   : > { %v935_v5 = vadd.f32 %v849_v62, %v687_v58 }
  0xf6   : > { %v971_v50 = vadd.f32 %v1813_v63, %v935_v5 }
  0xf7   : > { %v576_v7 = vpop.f32.mrf.mxu0  ;;  %923 = vmatmul.f32.gmra.mxu3 %v408_v17 }
  0xf8   : > { %1003 = vst [vmem:[%s1823_s22 + $0x28] sm:$0xff] %v971_v50  ;;  %899 = vmatmul.f32.gmra.mxu2 %v400_v44  ;;  %v689_v8 = vpop.f32.mrf.mxu1 }
  0xf9   : > { %v690_v14 = vadd.f32 %v689_v8, %v576_v7 }
  0xfa   : > { %623 = vmatmul.f32.gmra.mxu0 %v335_v57  ;;  %v1861_v15 = vpop.f32.mrf.mxu3 }
  0xfb   : > { %v852_v20 = vpop.f32.mrf.mxu2  ;;  %736 = vmatmul.f32.gmra.mxu1 %v271_v11 }
  0xfc   : > { %v936_v21 = vadd.f32 %v852_v20, %v690_v14 }
  0xfe   : > { %v972_v3 = vadd.f32 %v1813_v63, %v936_v21 }
  0xff   : > { %v579_v56 = vpop.f32.mrf.mxu0  ;;  %926 = vmatmul.f32.gmra.mxu3 %v409_v23 }
 0x100   : > { %1004 = vst [vmem:[%s1823_s22 + $0x30] sm:$0xff] %v972_v3  ;;  %902 = vmatmul.f32.gmra.mxu2 %v401_v55  ;;  %v692_v6 = vpop.f32.mrf.mxu1 }
 0x101   : > { %v693_v10 = vadd.f32 %v692_v6, %v579_v56 }
 0x102   : > { %626 = vmatmul.f32.gmra.mxu0 %v336_v12  ;;  %v1867_v24 = vpop.f32.mrf.mxu3 }
 0x103   : > { %v855_v19 = vpop.f32.mrf.mxu2  ;;  %739 = vmatmul.f32.gmra.mxu1 %v272_v18 }
 0x104   : > { %v937_v26 = vadd.f32 %v855_v19, %v693_v10 }
 0x106   : > { %v973_v22 = vadd.f32 %v1813_v63, %v937_v26 }
 0x107   : > { %v582_v25 = vpop.f32.mrf.mxu0 }
 0x108   : > { %1005 = vst [vmem:[%s1823_s22 + $0x38] sm:$0xff] %v973_v22  ;;  %v695_v13 = vpop.f32.mrf.mxu1 }
 0x109   : > { %v696_v16 = vadd.f32 %v695_v13, %v582_v25 }
 0x10a   : > { %v1871_v27 = vpop.f32.mrf.mxu3 }
 0x10b   : > { %v858_v29 = vpop.f32.mrf.mxu2 }
 0x10c   : > { %v938_v30 = vadd.f32 %v858_v29, %v696_v16 }
 0x10e   : > { %v974_v31 = vadd.f32 %v1813_v63, %v938_v30  ;;  %v744_v30 = vadd.f32 %v1871_v27, %v1815_v0 }
 0x10f   : > { %v585_v60 = vpop.f32.mrf.mxu0 }
 0x110   : > { %1006 = vst [vmem:[%s1823_s22 + $0x40] sm:$0xff] %v974_v31  ;;  %v698_v61 = vpop.f32.mrf.mxu1 }
 0x111   : > { %v699_v32 = vadd.f32 %v698_v61, %v585_v60 }
 0x112   : > { %v1875_v33 = vpop.f32.mrf.mxu3 }
 0x113   : > { %v861_v34 = vpop.f32.mrf.mxu2 }
 0x114   : > { %v939_v35 = vadd.f32 %v861_v34, %v699_v32 }
 0x116   : > { %v975_v36 = vadd.f32 %v1813_v63, %v939_v35 }
 0x117   : > { %v588_v38 = vpop.f32.mrf.mxu0 }
 0x118   : > { %1007 = vst [vmem:[%s1823_s22 + $0x48] sm:$0xff] %v975_v36  ;;  %v701_v39 = vpop.f32.mrf.mxu1 }
 0x119   : > { %v702_v40 = vadd.f32 %v701_v39, %v588_v38 }
 0x11a   : > { %v1879_v2 = vpop.f32.mrf.mxu3 }
 0x11b   : > { %v864_v4 = vpop.f32.mrf.mxu2 }
 0x11c   : > { %v940_v41 = vadd.f32 %v864_v4, %v702_v40  ;;  %v747_v40 = vadd.f32 %v1875_v33, %v1826_v1 }
 0x11e   : > { %v976_v42 = vadd.f32 %v1813_v63, %v940_v41 }
 0x11f   : > { %v591_v43 = vpop.f32.mrf.mxu0 }
 0x120   : > { %1008 = vst [vmem:[%s1823_s22 + $0x50] sm:$0xff] %v976_v42  ;;  %v704_v45 = vpop.f32.mrf.mxu1 }
 0x121   : > { %v705_v46 = vadd.f32 %v704_v45, %v591_v43 }
 0x122   : > { %v1883_v48 = vpop.f32.mrf.mxu3 }
 0x123   : > { %v867_v49 = vpop.f32.mrf.mxu2 }
 0x124   : > { %v941_v51 = vadd.f32 %v867_v49, %v705_v46 }
 0x126   : > { %v977_v9 = vadd.f32 %v1813_v63, %v941_v51  ;;  %v750_v51 = vadd.f32 %v1879_v2, %v1833_v28 }
 0x127   : > { %v594_v11 = vpop.f32.mrf.mxu0 }
 0x128   : > { %1009 = vst [vmem:[%s1823_s22 + $0x58] sm:$0xff] %v977_v9  ;;  %v707_v52 = vpop.f32.mrf.mxu1 }
 0x129   : > { %v708_v53 = vadd.f32 %v707_v52, %v594_v11 }
 0x12a   : > { %v1887_v54 = vpop.f32.mrf.mxu3 }
 0x12b   : > { %v870_v57 = vpop.f32.mrf.mxu2 }
 0x12c   : > { %v942_v58 = vadd.f32 %v870_v57, %v708_v53 }
 0x12e   : > { %v978_v62 = vadd.f32 %v1813_v63, %v942_v58 }
 0x12f   : > { %v597_v5 = vpop.f32.mrf.mxu0 }
 0x130   : > { %1010 = vst [vmem:[%s1823_s22 + $0x60] sm:$0xff] %v978_v62  ;;  %v710_v44 = vpop.f32.mrf.mxu1 }
 0x131   : > { %v711_v17 = vadd.f32 %v710_v44, %v597_v5  ;;  %v753_v5 = vadd.f32 %v1883_v48, %v1840_v37 }
 0x132   : > { %v1891_v18 = vpop.f32.mrf.mxu3 }
 0x133   : > { %v873_v50 = vpop.f32.mrf.mxu2 }
 0x134   : > { %v943_v7 = vadd.f32 %v873_v50, %v711_v17 }
 0x136   : > { %v979_v8 = vadd.f32 %v1813_v63, %v943_v7 }
 0x137   : > { %v600_v12 = vpop.f32.mrf.mxu0 }
 0x138   : > { %1011 = vst [vmem:[%s1823_s22 + $0x68] sm:$0xff] %v979_v8  ;;  %v713_v14 = vpop.f32.mrf.mxu1 }
 0x139   : > { %v714_v20 = vadd.f32 %v713_v14, %v600_v12 }
 0x13a   : > { %v1895_v21 = vpop.f32.mrf.mxu3 }
 0x13b   : > { %v876_v55 = vpop.f32.mrf.mxu2 }
 0x13c   : > { %v944_v23 = vadd.f32 %v876_v55, %v714_v20  ;;  %v756_v20 = vadd.f32 %v1887_v54, %v1847_v47 }
 0x13e   : > { %v980_v3 = vadd.f32 %v1813_v63, %v944_v23 }
 0x13f   : > { %v603_v56 = vpop.f32.mrf.mxu0 }
 0x140   : > { %1012 = vst [vmem:[%s1823_s22 + $0x70] sm:$0xff] %v980_v3  ;;  %v716_v6 = vpop.f32.mrf.mxu1 }
 0x141   : > { %v717_v10 = vadd.f32 %v716_v6, %v603_v56 }
 0x142   : > { %v1899_v19 = vpop.f32.mrf.mxu3 }
 0x143   : > { %v879_v26 = vpop.f32.mrf.mxu2 }
 0x144   : > { %v945_v22 = vadd.f32 %v879_v26, %v717_v10 }
 0x146   : > { %v981_v25 = vadd.f32 %v1813_v63, %v945_v22  ;;  %v759_v22 = vadd.f32 %v1891_v18, %v1854_v59 }
 0x147   : > { %v606_v13 = vpop.f32.mrf.mxu0 }
 0x148   : > { %1013 = vst [vmem:[%s1823_s22 + $0x78] sm:$0xff] %v981_v25  ;;  %v719_v16 = vpop.f32.mrf.mxu1 }
 0x149   : > { %v720_v29 = vadd.f32 %v719_v16, %v606_v13 }
 0x14a   : > { %v906_v60 = vpop.f32.mrf.mxu3 }
 0x14b   : > { %v882_v31 = vpop.f32.mrf.mxu2  ;;  %v954_v32 = vadd.f32 %v906_v60, %v744_v30 }
 0x14c   : > { %v946_v61 = vadd.f32 %v882_v31, %v720_v29 }
 0x14d   : > { %v990_v35 = vadd.f32 %v1813_v63, %v954_v32 }
 0x14e   : > { %v982_v34 = vadd.f32 %v1813_v63, %v946_v61  ;;  %v762_v61 = vadd.f32 %v1895_v21, %v1861_v15  ;;  %v765_v21 = vadd.f32 %v1899_v19, %v1867_v24 }
 0x14f   : > { %v609_v36 = vpop.f32.mrf.mxu0  ;;  %1022 = vst [vmem:[%s1823_s22 + $0xc0] sm:$0xff] %v990_v35 }
 0x150   : > { %1014 = vst [vmem:[%s1823_s22 + $0x80] sm:$0xff] %v982_v34  ;;  %v722_v38 = vpop.f32.mrf.mxu1 }
 0x151   : > { %v723_v39 = vadd.f32 %v722_v38, %v609_v36 }
 0x152   : > { %v909_v0 = vpop.f32.mrf.mxu3 }
 0x153   : > { %v885_v4 = vpop.f32.mrf.mxu2  ;;  %v955_v41 = vadd.f32 %v909_v0, %v747_v40 }
 0x154   : > { %v947_v27 = vadd.f32 %v885_v4, %v723_v39 }
 0x155   : > { %v991_v43 = vadd.f32 %v1813_v63, %v955_v41 }
 0x156   : > { %v983_v42 = vadd.f32 %v1813_v63, %v947_v27 }
 0x157   : > { %v612_v45 = vpop.f32.mrf.mxu0  ;;  %1023 = vst [vmem:[%s1823_s22 + $0xc8] sm:$0xff] %v991_v43 }
 0x158   : > { %1015 = vst [vmem:[%s1823_s22 + $0x88] sm:$0xff] %v983_v42  ;;  %v725_v46 = vpop.f32.mrf.mxu1 }
 0x159   : > { %v726_v49 = vadd.f32 %v725_v46, %v612_v45 }
 0x15a   : > { %v912_v1 = vpop.f32.mrf.mxu3 }
 0x15b   : > { %v888_v9 = vpop.f32.mrf.mxu2  ;;  %v956_v11 = vadd.f32 %v912_v1, %v750_v51 }
 0x15c   : > { %v948_v33 = vadd.f32 %v888_v9, %v726_v49 }
 0x15d   : > { %v992_v53 = vadd.f32 %v1813_v63, %v956_v11 }
 0x15e   : > { %v984_v52 = vadd.f32 %v1813_v63, %v948_v33 }
 0x15f   : > { %v615_v57 = vpop.f32.mrf.mxu0  ;;  %1024 = vst [vmem:[%s1823_s22 + $0xd0] sm:$0xff] %v992_v53 }
 0x160   : > { %1016 = vst [vmem:[%s1823_s22 + $0x90] sm:$0xff] %v984_v52  ;;  %v728_v58 = vpop.f32.mrf.mxu1 }
 0x161   : > { %v729_v62 = vadd.f32 %v728_v58, %v615_v57 }
 0x162   : > { %v915_v28 = vpop.f32.mrf.mxu3 }
 0x163   : > { %v891_v44 = vpop.f32.mrf.mxu2  ;;  %v957_v17 = vadd.f32 %v915_v28, %v753_v5 }
 0x164   : > { %v949_v2 = vadd.f32 %v891_v44, %v729_v62 }
 0x165   : > { %v993_v7 = vadd.f32 %v1813_v63, %v957_v17 }
 0x166   : > { %v985_v50 = vadd.f32 %v1813_v63, %v949_v2 }
 0x167   : > { %v618_v8 = vpop.f32.mrf.mxu0  ;;  %1025 = vst [vmem:[%s1823_s22 + $0xd8] sm:$0xff] %v993_v7 }
 0x168   : > { %1017 = vst [vmem:[%s1823_s22 + $0x98] sm:$0xff] %v985_v50  ;;  %v731_v12 = vpop.f32.mrf.mxu1 }
 0x169   : > { %v732_v14 = vadd.f32 %v731_v12, %v618_v8 }
 0x16a   : > { %v918_v37 = vpop.f32.mrf.mxu3 }
 0x16b   : > { %v894_v55 = vpop.f32.mrf.mxu2  ;;  %v958_v23 = vadd.f32 %v918_v37, %v756_v20 }
 0x16c   : > { %v950_v48 = vadd.f32 %v894_v55, %v732_v14 }
 0x16d   : > { %v994_v56 = vadd.f32 %v1813_v63, %v958_v23 }
 0x16e   : > { %v986_v3 = vadd.f32 %v1813_v63, %v950_v48 }
 0x16f   : > { %v621_v6 = vpop.f32.mrf.mxu0  ;;  %1026 = vst [vmem:[%s1823_s22 + $0xe0] sm:$0xff] %v994_v56 }
 0x170   : > { %1018 = vst [vmem:[%s1823_s22 + $0xa0] sm:$0xff] %v986_v3  ;;  %v734_v10 = vpop.f32.mrf.mxu1 }
 0x171   : > { %v735_v26 = vadd.f32 %v734_v10, %v621_v6 }
 0x172   : > { %v921_v47 = vpop.f32.mrf.mxu3 }
 0x173   : > { %v897_v25 = vpop.f32.mrf.mxu2  ;;  %v959_v13 = vadd.f32 %v921_v47, %v759_v22 }
 0x174   : > { %v951_v54 = vadd.f32 %v897_v25, %v735_v26 }
 0x175   : > { %v995_v29 = vadd.f32 %v1813_v63, %v959_v13 }
 0x176   : > { %v987_v16 = vadd.f32 %v1813_v63, %v951_v54 }
 0x177   : > { %v624_v30 = vpop.f32.mrf.mxu0  ;;  %1027 = vst [vmem:[%s1823_s22 + $0xe8] sm:$0xff] %v995_v29 }
 0x178   : > { %1019 = vst [vmem:[%s1823_s22 + $0xa8] sm:$0xff] %v987_v16  ;;  %v737_v31 = vpop.f32.mrf.mxu1 }
 0x179   : > { %v738_v60 = vadd.f32 %v737_v31, %v624_v30 }
 0x17a   : > { %v924_v18 = vpop.f32.mrf.mxu3 }
 0x17b   : > { %v900_v59 = vpop.f32.mrf.mxu2  ;;  %v960_v34 = vadd.f32 %v924_v18, %v762_v61 }
 0x17c   : > { %v952_v32 = vadd.f32 %v900_v59, %v738_v60 }
 0x17d   : > { %v996_v36 = vadd.f32 %v1813_v63, %v960_v34 }
 0x17e   : > { %v988_v35 = vadd.f32 %v1813_v63, %v952_v32 }
 0x17f   : > { %v627_v38 = vpop.f32.mrf.mxu0  ;;  %1028 = vst [vmem:[%s1823_s22 + $0xf0] sm:$0xff] %v996_v36 }
 0x180   : > { %1020 = vst [vmem:[%s1823_s22 + $0xb0] sm:$0xff] %v988_v35  ;;  %v740_v39 = vpop.f32.mrf.mxu1 }
 0x181   : > { %v741_v15 = vadd.f32 %v740_v39, %v627_v38 }
 0x182   : > { %v927_v4 = vpop.f32.mrf.mxu3 }
 0x183   : > { %v903_v40 = vpop.f32.mrf.mxu2  ;;  %v961_v27 = vadd.f32 %v927_v4, %v765_v21 }
 0x184   : > { %v953_v0 = vadd.f32 %v903_v40, %v741_v15 }
 0x185   : > { %v997_v42 = vadd.f32 %v1813_v63, %v961_v27 }
 0x186   : > { %v989_v41 = vadd.f32 %v1813_v63, %v953_v0 }
 0x187   : > { %1029 = vst [vmem:[%s1823_s22 + $0xf8] sm:$0xff] %v997_v42 }
 0x188   : > { %1021 = vst [vmem:[%s1823_s22 + $0xb8] sm:$0xff] %v989_v41 }
 0x189   : > { %1387 = shalt.err (!%p1384_p0)
}
 0x18a   : > { %s1451_s6 = smov 128   ;;  %s1452_s7 = smov 8  }
 0x18b   : > { %1228 = dma.vmem_to_hbm [thread:$0]  (%p1555_p5), %s1045_s15, 4096, %s1047_s19, %s1031_s24, %s1451_s6, %s1451_s6, %s1452_s7  }
 0x18c PF: > { %s1061_s1 = sand.u32 1, %s1426_s12   ;;  %p1239_p3 = pnand %p1159_p11, %p1522_p6 }
 0x18d   : > { %s1062_s20 = scalar_lea.sflag [#allocation5], %s1061_s1 }
 0x18e   : > { %p1240_p7 = pneg %p1239_p3 }
 0x190   : > { %1421 = dma.done.wait (%p1240_p7), %s1062_s20, 4096  }
 0x191   : > { %1423 = vsyncadd (%p1240_p7), %s1062_s20, 4294963200  ;;  %s20_s17 = sadd.s32 1, %s1446_s17   ;;  %s2005_s12 = smov %s1430_s13 }
 0x192   : > { %p17_p9 = scmp.ge.s32.totalorder %s20_s17, 4   ;;  %s2006_s13 = smov %s1434_s14 }
 0x193   : > { %s2007_s14 = smov %s1564_s18  ;;  %s2008_s15 = smov %s1442_s16 }
 0x194   : > { %s2009_s16 = smov %s2011_s5  ;;  %19 = sbr.rel (!%p17_p9) target bundleno = 9 (0x9), region = 95 }
 0x199   :  { %1068 = vsyncpa [#allocation4], 1 }
 0x19a   :  { %1070 = vsyncpa [#allocation4 + $0x1], 1 }
 0x19b   :  { %1071 = vsyncpa [#allocation7], 1 }
 0x19c   :  { %1072 = vsyncpa [#allocation5], 1 }
 0x19d   :  { %1074 = vsyncpa [#allocation5 + $0x1], 1 }

</bundles_post_ra>
